<compile_context>
chip_gen: v6e
topology: v6e:2x2x1
jax: 0.10.0
libtpu: 0.0.40
codegen_flags: <defaults>
</compile_context>

<pallas_src>
import math

import jax
import jax.numpy as jnp
from jax.experimental import pallas as pl
from jax.experimental.pallas import tpu as pltpu


def _conv3x3_tile_kernel(xt_ref, xc_ref, xb_ref, w_ref, o_ref):
    """One (batch, row-tile) step of a 3x3 / stride-1 / pad-1 conv (no bias).

    xt_ref: (1, 1,  W, Cin)  input row r0-1 (clamped; zeroed here at the top edge)
    xc_ref: (1, TH, W, Cin)  input rows r0 .. r0+TH-1
    xb_ref: (1, 1,  W, Cin)  input row r0+TH (clamped; zeroed here at the bottom edge)
    w_ref : (9*Cin, Cout)    weights, rows ordered (kh, kw, cin)-major
    o_ref : (1, TH, W, Cout) conv output rows r0 .. r0+TH-1
    """
    _, TH, W, Cin = xc_ref.shape
    Cout = o_ref.shape[-1]
    h = pl.program_id(1)
    nh = pl.num_programs(1)
    dt = xc_ref.dtype

    # Height halo: zero the halo row when this tile touches the image border (pad=1).
    top = xt_ref[0] * (h > 0).astype(dt)                      # (1, W, Cin)
    bot = xb_ref[0] * (h < nh - 1).astype(dt)                 # (1, W, Cin)
    xh = jnp.concatenate([top, xc_ref[0], bot], axis=0)       # (TH+2, W, Cin)

    # Width halo in-register: left/right shifted copies with a zero column.
    zcol = jnp.zeros((TH + 2, 1, Cin), dt)
    x_l = jnp.concatenate([zcol, xh[:, :W - 1, :]], axis=1)   # col w -> input col w-1
    x_r = jnp.concatenate([xh[:, 1:, :], zcol], axis=1)       # col w -> input col w+1

    # im2col slab -> ONE matmul with K = 9*Cin (instead of 9 K=Cin dots).
    taps = []
    for kh in range(3):
        for xs in (x_l, xh, x_r):                             # kw = 0, 1, 2
            taps.append(xs[kh:kh + TH].reshape(TH * W, Cin))
    a = jnp.concatenate(taps, axis=-1)                        # (TH*W, 9*Cin)

    acc = jnp.dot(a, w_ref[...], preferred_element_type=jnp.float32)
    o_ref[0] = acc.reshape(TH, W, Cout).astype(o_ref.dtype)


def _pick_tile_h(H, W, Cin, Cout, budget_bytes=10 * 1024 * 1024):
    """Largest row-tile (multiple of 8, dividing H) that fits the VMEM budget,
    preferring >=2 tiles along H so both v7x TensorCores get work."""
    cands = [d for d in range(8, H + 1, 8) if H % d == 0]
    if not cands:
        return H  # odd H: whole-image rows (still correct; block == full extent)

    def vmem_cost(th):
        elt = 4
        io = 2 * (th * W * Cin + 2 * W * Cin + th * W * Cout) * elt  # double-buffered blocks
        work = th * W * (9 * Cin + 2 * Cout) * elt                   # im2col slab + f32 acc
        return io + work

    fit = [t for t in cands if vmem_cost(t) <= budget_bytes]
    if not fit:
        return cands[0]  # best effort: smallest 8-multiple tile
    multi = [t for t in fit if H // t >= 2]
    return max(multi) if multi else max(fit)


def upsample_pallas(x_nchw, w_flat):
    """Conv2d(C -> 2C, 3x3, pad=1, bias=False) + PixelShuffle(2) on an NCHW input."""
    N, Cin, H, W = x_nchw.shape
    Cout = w_flat.shape[1]
    c_half = Cout // 4

    x = jnp.transpose(x_nchw, (0, 2, 3, 1))  # NHWC: channels on lanes
    TH = _pick_tile_h(H, W, Cin, Cout)
    nh = H // TH

    y = pl.pallas_call(
        _conv3x3_tile_kernel,
        out_shape=jax.ShapeDtypeStruct((N, H, W, Cout), x.dtype),
        grid_spec=pltpu.PrefetchScalarGridSpec(
            num_scalar_prefetch=0,
            grid=(N, nh),
            in_specs=[
                # 1-row top halo (row r0-1, clamped at the top edge; zeroed in-kernel).
                pl.BlockSpec((1, 1, W, Cin),
                             lambda n, h: (n, jnp.maximum(h * TH - 1, 0), 0, 0)),
                # current TH-row band.
                pl.BlockSpec((1, TH, W, Cin), lambda n, h: (n, h, 0, 0)),
                # 1-row bottom halo (row r0+TH, clamped at the bottom edge).
                pl.BlockSpec((1, 1, W, Cin),
                             lambda n, h: (n, jnp.minimum(h * TH + TH, H - 1), 0, 0)),
                # weights: constant index_map -> fetched once, reused across the grid.
                pl.BlockSpec((9 * Cin, Cout), lambda n, h: (0, 0)),
            ],
            out_specs=pl.BlockSpec((1, TH, W, Cout), lambda n, h: (n, h, 0, 0)),
        ),
        compiler_params=pltpu.CompilerParams(
            dimension_semantics=("parallel", "parallel"),
            vmem_limit_bytes=32 * 1024 * 1024,
        ),
    )(x, x, x, w_flat)

    # Fused PixelShuffle(2) + NHWC->NCHW: one transpose pass.
    # conv channel cout = c*4 + 2*i + j  ->  out[n, c, 2h+i, 2w+j]
    y = y.reshape(N, H, W, c_half, 2, 2)
    y = jnp.transpose(y, (0, 3, 1, 4, 2, 5))
    return y.reshape(N, c_half, 2 * H, 2 * W)


_upsample_jit = jax.jit(upsample_pallas)


class UpSamplePallas:
    """UpSample: Conv2d(C -> 2C, k=3, p=1, bias=False) + PixelShuffle(2).

    Input  (NCHW): (N, C, H, W)   Output (NCHW): (N, C//2, 2H, 2W)
    """

    def __init__(self, channels, key):
        out_ch = channels * 2
        fan_in = channels * 9
        bound = 1.0 / math.sqrt(fan_in)  # kaiming-uniform-ish (PyTorch Conv2d default)
        w_oihw = jax.random.uniform(
            key, (out_ch, channels, 3, 3), jnp.float32, -bound, bound)
        self.w_oihw = w_oihw
        # (kh, kw, cin)-major rows x cout columns — matches the kernel's tap order.
        self.w_flat = jnp.transpose(w_oihw, (2, 3, 1, 0)).reshape(9 * channels, out_ch)
        self.channels = channels

    def __call__(self, x_nchw):
        return _upsample_jit(x_nchw, self.w_flat)


def _pixel_shuffle_nchw(y, r):
    N, C, H, W = y.shape
    c = C // (r * r)
    y = y.reshape(N, c, r, r, H, W)
    y = y.transpose(0, 1, 4, 2, 5, 3)
    return y.reshape(N, c, H * r, W * r)


def _reference(x_nchw, w_oihw):
    y = jax.lax.conv_general_dilated(
        x_nchw, w_oihw, window_strides=(1, 1), padding="SAME",
        dimension_numbers=("NCHW", "OIHW", "NCHW"))
    return _pixel_shuffle_nchw(y, 2)


if __name__ == "__main__":
    key = jax.random.PRNGKey(0)
    kx, kw = jax.random.split(key)

    N, C, H, W = 2, 4, 16, 16
    x = jax.random.normal(kx, (N, C, H, W), jnp.float32)

    model = UpSamplePallas(C, kw)
    out = jax.block_until_ready(model(x))

    assert out.shape == (N, C // 2, 2 * H, 2 * W), out.shape

    ref = jax.block_until_ready(_reference(x, model.w_oihw))
    assert jnp.allclose(out, ref, atol=1e-4, rtol=1e-4), \
        float(jnp.max(jnp.abs(out - ref)))

    print("KERNEL_OK")
</pallas_src>

<mosaic_0001>
module attributes {stable_mosaic.version = 11 : i64} {
  func.func @_conv3x3_tile_kernel(%arg0: i32, %arg1: i32, %arg2: memref<1x1x16x4xf32, #tpu.memory_space<vmem>>, %arg3: memref<1x8x16x4xf32, #tpu.memory_space<vmem>>, %arg4: memref<1x1x16x4xf32, #tpu.memory_space<vmem>>, %arg5: memref<36x8xf32, #tpu.memory_space<vmem>>, %arg6: memref<1x8x16x8xf32, #tpu.memory_space<vmem>>) attributes {dimension_semantics = [#tpu.dimension_semantics<parallel>, #tpu.dimension_semantics<parallel>], iteration_bounds = array<i64: 2, 2>, scalar_prefetch = 0 : i64, scratch_operands = 0 : i64, tpu.core_type = #tpu.core_type<tc>, window_params = [{transform_indices = @transform_0, window_bounds = array<i64: 1, 1, 16, 4>}, {transform_indices = @transform_1, window_bounds = array<i64: 1, 8, 16, 4>}, {transform_indices = @transform_2, window_bounds = array<i64: 1, 1, 16, 4>}, {pipeline_mode = #tpu.pipeline_mode<synchronous>, transform_indices = @transform_3, window_bounds = array<i64: 36, 8>}, {transform_indices = @transform_4, window_bounds = array<i64: 1, 8, 16, 8>}]} {
    %c0 = arith.constant 0 : index
    %c0_0 = arith.constant 0 : index
    %c0_1 = arith.constant 0 : index
    %c0_2 = arith.constant 0 : index
    %0 = vector.load %arg2[%c0, %c0_0, %c0_1, %c0_2] : memref<1x1x16x4xf32, #tpu.memory_space<vmem>>, vector<1x1x16x4xf32>
    %1 = vector.shape_cast %0 : vector<1x1x16x4xf32> to vector<1x16x4xf32>
    %c0_i32 = arith.constant 0 : i32
    %2 = arith.cmpi sgt, %arg1, %c0_i32 : i32
    %3 = arith.extui %2 : i1 to i32
    %4 = arith.sitofp %3 : i32 to f32
    %5 = vector.broadcast %4 : f32 to vector<1x16x4xf32>
    %6 = arith.mulf %1, %5 : vector<1x16x4xf32>
    %c0_3 = arith.constant 0 : index
    %c0_4 = arith.constant 0 : index
    %c0_5 = arith.constant 0 : index
    %c0_6 = arith.constant 0 : index
    %7 = vector.load %arg4[%c0_3, %c0_4, %c0_5, %c0_6] : memref<1x1x16x4xf32, #tpu.memory_space<vmem>>, vector<1x1x16x4xf32>
    %8 = vector.shape_cast %7 : vector<1x1x16x4xf32> to vector<1x16x4xf32>
    %c1_i32 = arith.constant 1 : i32
    %9 = arith.cmpi slt, %arg1, %c1_i32 : i32
    %10 = arith.extui %9 : i1 to i32
    %11 = arith.sitofp %10 : i32 to f32
    %12 = vector.broadcast %11 : f32 to vector<1x16x4xf32>
    %13 = arith.mulf %8, %12 : vector<1x16x4xf32>
    %c0_7 = arith.constant 0 : index
    %c0_8 = arith.constant 0 : index
    %c0_9 = arith.constant 0 : index
    %c0_10 = arith.constant 0 : index
    %14 = vector.load %arg3[%c0_7, %c0_8, %c0_9, %c0_10] : memref<1x8x16x4xf32, #tpu.memory_space<vmem>>, vector<1x8x16x4xf32>
    %15 = vector.shape_cast %14 : vector<1x8x16x4xf32> to vector<8x16x4xf32>
    %16 = tpu.concatenate %6, %15, %13 in 0 : vector<1x16x4xf32>, vector<8x16x4xf32>, vector<1x16x4xf32> -> vector<10x16x4xf32>
    %cst = arith.constant 0.000000e+00 : f32
    %17 = vector.broadcast %cst : f32 to vector<10x1x4xf32>
    %18 = vector.extract_strided_slice %16 {offsets = [0, 0, 0], sizes = [10, 15, 4], strides = [1, 1, 1]} : vector<10x16x4xf32> to vector<10x15x4xf32>
    %19 = tpu.concatenate %17, %18 in 1 : vector<10x1x4xf32>, vector<10x15x4xf32> -> vector<10x16x4xf32>
    %20 = vector.extract_strided_slice %16 {offsets = [0, 1, 0], sizes = [10, 15, 4], strides = [1, 1, 1]} : vector<10x16x4xf32> to vector<10x15x4xf32>
    %21 = tpu.concatenate %20, %17 in 1 : vector<10x15x4xf32>, vector<10x1x4xf32> -> vector<10x16x4xf32>
    %22 = vector.extract_strided_slice %19 {offsets = [0, 0, 0], sizes = [8, 16, 4], strides = [1, 1, 1]} : vector<10x16x4xf32> to vector<8x16x4xf32>
    %23 = vector.shape_cast %22 : vector<8x16x4xf32> to vector<128x4xf32>
    %24 = vector.extract_strided_slice %16 {offsets = [0, 0, 0], sizes = [8, 16, 4], strides = [1, 1, 1]} : vector<10x16x4xf32> to vector<8x16x4xf32>
    %25 = vector.shape_cast %24 : vector<8x16x4xf32> to vector<128x4xf32>
    %26 = vector.extract_strided_slice %21 {offsets = [0, 0, 0], sizes = [8, 16, 4], strides = [1, 1, 1]} : vector<10x16x4xf32> to vector<8x16x4xf32>
    %27 = vector.shape_cast %26 : vector<8x16x4xf32> to vector<128x4xf32>
    %28 = vector.extract_strided_slice %19 {offsets = [1, 0, 0], sizes = [8, 16, 4], strides = [1, 1, 1]} : vector<10x16x4xf32> to vector<8x16x4xf32>
    %29 = vector.shape_cast %28 : vector<8x16x4xf32> to vector<128x4xf32>
    %30 = vector.extract_strided_slice %16 {offsets = [1, 0, 0], sizes = [8, 16, 4], strides = [1, 1, 1]} : vector<10x16x4xf32> to vector<8x16x4xf32>
    %31 = vector.shape_cast %30 : vector<8x16x4xf32> to vector<128x4xf32>
    %32 = vector.extract_strided_slice %21 {offsets = [1, 0, 0], sizes = [8, 16, 4], strides = [1, 1, 1]} : vector<10x16x4xf32> to vector<8x16x4xf32>
    %33 = vector.shape_cast %32 : vector<8x16x4xf32> to vector<128x4xf32>
    %34 = vector.extract_strided_slice %19 {offsets = [2, 0, 0], sizes = [8, 16, 4], strides = [1, 1, 1]} : vector<10x16x4xf32> to vector<8x16x4xf32>
    %35 = vector.shape_cast %34 : vector<8x16x4xf32> to vector<128x4xf32>
    %36 = vector.extract_strided_slice %16 {offsets = [2, 0, 0], sizes = [8, 16, 4], strides = [1, 1, 1]} : vector<10x16x4xf32> to vector<8x16x4xf32>
    %37 = vector.shape_cast %36 : vector<8x16x4xf32> to vector<128x4xf32>
    %38 = vector.extract_strided_slice %21 {offsets = [2, 0, 0], sizes = [8, 16, 4], strides = [1, 1, 1]} : vector<10x16x4xf32> to vector<8x16x4xf32>
    %39 = vector.shape_cast %38 : vector<8x16x4xf32> to vector<128x4xf32>
    %40 = tpu.concatenate %23, %25, %27, %29, %31, %33, %35, %37, %39 in 1 : vector<128x4xf32>, vector<128x4xf32>, vector<128x4xf32>, vector<128x4xf32>, vector<128x4xf32>, vector<128x4xf32>, vector<128x4xf32>, vector<128x4xf32>, vector<128x4xf32> -> vector<128x36xf32>
    %c0_11 = arith.constant 0 : index
    %c0_12 = arith.constant 0 : index
    %41 = vector.load %arg5[%c0_11, %c0_12] : memref<36x8xf32, #tpu.memory_space<vmem>>, vector<36x8xf32>
    %cst_13 = arith.constant dense<0.000000e+00> : vector<128x8xf32>
    %42 = tpu.matmul %40, %41, %cst_13 {dimension_numbers = #tpu.dot_dimension_numbers<[1], [0], [0], [1], [0, 0, 1, 1], [], []>} : vector<128x36xf32>, vector<36x8xf32>, vector<128x8xf32> -> vector<128x8xf32>
    %43 = vector.shape_cast %42 : vector<128x8xf32> to vector<8x16x8xf32>
    %c0_14 = arith.constant 0 : index
    %c0_15 = arith.constant 0 : index
    %c0_16 = arith.constant 0 : index
    %c0_17 = arith.constant 0 : index
    %44 = vector.load %arg6[%c0_14, %c0_15, %c0_16, %c0_17] : memref<1x8x16x8xf32, #tpu.memory_space<vmem>>, vector<1x8x16x8xf32>
    %45 = vector.shape_cast %44 : vector<1x8x16x8xf32> to vector<8x16x8xf32>
    %46 = vector.shape_cast %43 : vector<8x16x8xf32> to vector<1x8x16x8xf32>
    tpu.vector_store %arg6[%c0_14, %c0_15, %c0_16, %c0_17], %46 {strides = array<i32>} : memref<1x8x16x8xf32, #tpu.memory_space<vmem>>, vector<1x8x16x8xf32>,
    return
  }
  func.func @transform_0(%arg0: i32, %arg1: i32) -> (i32, i32, i32, i32) {
    %c8_i32 = arith.constant 8 : i32
    %0 = arith.muli %arg1, %c8_i32 : i32
    %c1_i32 = arith.constant 1 : i32
    %1 = arith.subi %0, %c1_i32 : i32
    %c0_i32 = arith.constant 0 : i32
    %2 = arith.maxsi %1, %c0_i32 : i32
    %c0_i32_0 = arith.constant 0 : i32
    %c0_i32_1 = arith.constant 0 : i32
    %c0_i32_2 = arith.constant 0 : i32
    return %arg0, %2, %c0_i32_0, %c0_i32_1 : i32, i32, i32, i32
  }
  func.func @transform_1(%arg0: i32, %arg1: i32) -> (i32, i32, i32, i32) {
    %c0_i32 = arith.constant 0 : i32
    %c0_i32_0 = arith.constant 0 : i32
    %c0_i32_1 = arith.constant 0 : i32
    return %arg0, %arg1, %c0_i32, %c0_i32_0 : i32, i32, i32, i32
  }
  func.func @transform_2(%arg0: i32, %arg1: i32) -> (i32, i32, i32, i32) {
    %c8_i32 = arith.constant 8 : i32
    %0 = arith.muli %arg1, %c8_i32 : i32
    %c8_i32_0 = arith.constant 8 : i32
    %1 = arith.addi %0, %c8_i32_0 : i32
    %c15_i32 = arith.constant 15 : i32
    %2 = arith.minsi %1, %c15_i32 : i32
    %c0_i32 = arith.constant 0 : i32
    %c0_i32_1 = arith.constant 0 : i32
    %c0_i32_2 = arith.constant 0 : i32
    return %arg0, %2, %c0_i32, %c0_i32_1 : i32, i32, i32, i32
  }
  func.func @transform_3(%arg0: i32, %arg1: i32) -> (i32, i32) {
    %c0_i32 = arith.constant 0 : i32
    %c0_i32_0 = arith.constant 0 : i32
    %c0_i32_1 = arith.constant 0 : i32
    return %c0_i32, %c0_i32_0 : i32, i32
  }
  func.func @transform_4(%arg0: i32, %arg1: i32) -> (i32, i32, i32, i32) {
    %c0_i32 = arith.constant 0 : i32
    %c0_i32_0 = arith.constant 0 : i32
    %c0_i32_1 = arith.constant 0 : i32
    return %arg0, %arg1, %c0_i32, %c0_i32_0 : i32, i32, i32, i32
  }
}

</mosaic_0001>

<bundles_post_ra>
// kernel: upsample_pallas.1
= control target key start
LH: loop header
LB: loop body
LE: loop exit
PB: predicated region body
PF: predicated region fallthrough
CT: control target
= control target key end

     0   :  { %s1670_s15 = smov 0   ;;  %s1672_s16 = smov 0   ;;  %s2449_s0 = inlined_call_operand.vmem [shape: f32[2,16,16,4], index: 0, kind: input, shape index: {}, may-alias: {0,1,2}]   ;;  %s2450_s1 = inlined_call_operand.vmem [shape: f32[2,16,16,4], index: 1, kind: input, shape index: {}, may-alias: {0,1,2}]   ;;  %s2451_s2 = inlined_call_operand.vmem [shape: f32[2,16,16,4], index: 2, kind: input, shape index: {}, may-alias: {0,1,2}]   ;;  %s2452_s3 = inlined_call_operand.vmem [shape: f32[36,8], index: 3, kind: input, shape index: {}]   ;;  %s2453_s4 = inlined_call_operand.vmem [shape: f32[2,16,16,8], index: 4, kind: output, shape index: {}]  }
   0x1   :  { %s1674_s17 = smov 0   ;;  %s1676_s18 = smov 0  }
   0x2   :  { %s1678_s19 = smov 0  }
   0x3 LB: > { %s23_s20 = sadd.s32 1, %s1627_s17  ;;  %s26_s21 = sadd.s32 1, %s1631_s18  ;;  %s1635_s19 = sphi %s1678_s19, %s14_s19   ;;  %s1631_s18 = sphi %s1676_s18, %s2493_s18   ;;  %s1627_s17 = sphi %s1674_s17, %s2492_s17   ;;  %s1623_s16 = sphi %s1672_s16, %s2491_s16   ;;  %s1619_s15 = sphi %s1670_s15, %s2490_s15  }
   0x4   : > { %p24_p0 = scmp.ge.s32.totalorder %s23_s20, 2  ;;  %p1437_p1 = scmp.ge.s32.totalorder %s1635_s19, 1 }
   0x5   : > { %p248_p2 = scmp.lt.s32.totalorder %s1635_s19, 5 }
   0x6   : > { %s2495_s20 = smov (%p24_p0, %s23_s20), 0  ;;  %s2497_s21 = smov (!%p24_p0, %s26_s21), %s1631_s18 }
   0x7   : > { %p249_p3 = pnand %p1437_p1, %p248_p2  ;;  %p28_p4 = scmp.ge.s32.totalorder %s2497_s21, 2 }
   0x9   : > { %s2499_s21 = smov (%p28_p4, %s2497_s21), 0  ;;  %252 = sbr.rel (%p249_p3) target bundleno = 589 (0x24d), region = 36 }
   0xe   : > { %s1703_s22 = sshll.u32 %s1619_s15, 3  ;;  %p314_p5 = scmp.lt.s32.totalorder %s1623_s16, 1  ;;  %vm477_vm0 = vcmask 1046528   ;;  %vm418_vm1 = vcmask 1040384   ;;  %v1071_v52 = vld [vmem:[%s2452_s3 + $0x20] sm:$0xf] }
   0xf   : > { %p330_p6 = scmp.lt.s32.totalorder %s1703_s22, 15  ;;  %s1439_s27 = sadd.s32 4294967295, %s1703_s22  ;;  %vm1121_vm2 = vcmask 1043456   ;;  %v1070_v56 = vld [vmem:[%s2452_s3 + $0x18] sm:$0xff]  ;;  %v1069_v57 = vld [vmem:[%s2452_s3 + $0x10] sm:$0xff]  ;;  %v1068_v59 = vld [vmem:[%s2452_s3 + $0x8] sm:$0xff] }
  0x10   : > { %s2501_s16 = smov (!%p314_p5, %s1623_s16), 1  ;;  %p312_p7 = scmp.gt.s32.totalorder %s1439_s27, 0  ;;  %1505 = vmatprep.subr.msk.mxu0 %vm1121_vm2, %v1071_v52  ;;  %1539 = vmatprep.subr.msk.mxu1 %vm1121_vm2, %v1071_v52  ;;  %v1067_v60 = vld [vmem:[%s2452_s3] sm:$0xff]  ;;  %vm931_vm3 = vcmask 31744   ;;  %vm948_vm4 = vcmask 64512   ;;  %vm965_vm5 = vcmask 97280  }
  0x11   : > { %s331_s23 = scalar_select %p330_p6, %s1703_s22, 15  ;;  %1506 = vmatpush3.msk.msra.mxu0 %vm1121_vm2, %v1071_v52  ;;  %1544 = vmatpush3.msk.msra.mxu1 %vm1121_vm2, %v1071_v52  ;;  %vm982_vm6 = vcmask 130048   ;;  %vm999_vm7 = vcmask 162816   ;;  %vm1016_vm8 = vcmask 195584   ;;  %vm1033_vm9 = vcmask 228352  }
  0x12   : > { %s1707_s24 = sshll.u32 %s2501_s16, 5  ;;  %p1440_p8 = scmp.lt.s32.totalorder %s1439_s27, 15  ;;  %1507 = vmatprep.subr.mxu0 %v1070_v56  ;;  %1540 = vmatprep.subr.mxu1 %v1070_v56  ;;  %vm1050_vm10 = vcmask 261120   ;;  %vm1072_vm11 = vcmask 293888  }
  0x13   : > { %s1449_s25 = sshll.u32 %s331_s23, 1  ;;  %s1637_s7 = smov 4   ;;  %1508 = vmatpush3.msra.mxu0 %v1070_v56  ;;  %1545 = vmatpush3.msra.mxu1 %v1070_v56 }
  0x14   : > { %s1710_s26 = sadd.s32 %s1449_s25, %s1707_s24  ;;  %p368_p9 = scmp.gt.s32.totalorder %s1619_s15, 0  ;;  %1509 = vmatprep.subr.mxu0 %v1069_v57  ;;  %1541 = vmatprep.subr.mxu1 %v1069_v57 }
  0x15   : > { %s1451_s28 = sshll.u32 %s1710_s26, 3  ;;  %s1638_s10 = smov 8   ;;  %1510 = vmatpush3.msra.mxu0 %v1069_v57  ;;  %1546 = vmatpush3.msra.mxu1 %v1069_v57 }
  0x16   : > { %s1719_s5 = scalar_lea.vmem %s2450_s1, %s1451_s28  ;;  %s1639_s11 = smov 12   ;;  %1511 = vmatprep.subr.mxu0 %v1068_v59  ;;  %1542 = vmatprep.subr.mxu1 %v1068_v59 }
  0x17   : > { %v1722_v0 = vld [vmem:[%s1719_s5 + $0x38] sm:$0xff]  ;;  %v1725_v1 = vld [vmem:[%s1719_s5 + $0x30] sm:$0xff]  ;;  %v1728_v2 = vld [vmem:[%s1719_s5] sm:$0xff]  ;;  %s313_s6 = scalar_select %p312_p7, %s1439_s27, 0  ;;  %1512 = vmatpush3.msra.mxu0 %v1068_v59  ;;  %1547 = vmatpush3.msra.mxu1 %v1068_v59 }
  0x18   : > { %546 = vrot.lane.b32.xlu1 %v1722_v0, %s1637_s7  ;;  %544 = vrot.lane.b32.xlu0 %v1725_v1, %s1637_s7  ;;  %v490_v3 = vrot.slane %v1725_v1, 1  ;;  %v491_v4 = vrot.slane %v1722_v0, 1  ;;  %v422_v5 = vrot.slane %v1728_v2, 7  ;;  %s369_s8 = scalar_select %p368_p9, 1, 0  ;;  %v1757_v10 = vld [vmem:[%s1719_s5 + $0x40] sm:$0xff] }
  0x19   : > { %s2503_s6 = smov (!%p1440_p8, %s313_s6), 15  ;;  %2466 = vst [vmem:[#allocation2_spill] sm:$0xff] %v1757_v10  ;;  %v434_v15 = vrot.slane %v1757_v10, 7  ;;  %v1768_v18 = vld [vmem:[%s1719_s5 + $0x48] sm:$0xff]  ;;  %s1640_s27 = smov 16   ;;  %v493_v30 = vrot.slane %v1757_v10, 1  ;;  %1513 = vmatprep.subr.mxu0 %v1067_v60  ;;  %1543 = vmatprep.subr.mxu1 %v1067_v60 }
  0x1a   : > { %v1740_v6 = vsel %vm477_vm0, %v490_v3, %v491_v4  ;;  %v1743_v7 = vsel %vm418_vm1, 0.0, %v422_v5  ;;  %s1445_s9 = sshll.u32 %s2503_s6, 1  ;;  %s370_s13 = scvt.s32.f32 %s369_s8  ;;  %v1751_v8 = vsel %vm477_vm0, %v491_v4, 0.0  ;;  %2467 = vst [vmem:[#allocation3_spill] sm:$0xff] %v1768_v18  ;;  %v383_v20 = vld [vmem:[%s1719_s5 + $0x8] sm:$0xff]  ;;  %v435_v24 = vrot.slane %v1768_v18, 7  ;;  %1514 = vmatpush3.msra.mxu0 %v1067_v60  ;;  %1548 = vmatpush3.msra.mxu1 %v1067_v60 }
  0x1b   : > { %s320_s12 = sadd.s32 %s1707_s24, %s1445_s9  ;;  %v1775_v23 = vsel %vm418_vm1, 0.0, %v434_v15  ;;  %v423_v27 = vrot.slane %v383_v20, 7  ;;  %v494_v31 = vrot.slane %v1768_v18, 1  ;;  %v481_v32 = vrot.slane %v1728_v2, 1  ;;  %s1641_s29 = smov 20   ;;  %v1823_v36 = vld [vmem:[%s1719_s5 + $0x50] sm:$0xff] }
  0x1c   : > { %600 = vrot.lane.b32.xlu1 %v1740_v6, %s1638_s10  ;;  %640 = vrot.lane.b32.xlu0 %v1743_v7, %s1639_s11  ;;  %s1447_s14 = sshll.u32 %s320_s12, 3  ;;  %v371_v9 = vstv %s370_s13  ;;  %2468 = vst [vmem:[#allocation4_spill] sm:$0xff] %v1775_v23  ;;  %v1788_v28 = vsel %vm418_vm1, %v434_v15, %v435_v24  ;;  %v482_v33 = vrot.slane %v383_v20, 1  ;;  %v1828_v37 = vld [vmem:[%s1719_s5 + $0x10] sm:$0xff]  ;;  %v437_v39 = vrot.slane %v1823_v36, 7  ;;  %s1642_s30 = smov 24  }
  0x1d   : > { %s322_s25 = scalar_lea.vmem %s2449_s0, %s1447_s14  ;;  %v1792_v29 = vsel %vm418_vm1, %v422_v5, %v423_v27  ;;  %v1812_v34 = vsel %vm477_vm0, %v493_v30, %v494_v31  ;;  %v1831_v38 = vsel %vm477_vm0, %v494_v31, 0.0  ;;  %v425_v41 = vrot.slane %v1828_v37, 7  ;;  %v1851_v44 = vld [vmem:[%s1719_s5 + $0x58] sm:$0xff]  ;;  %s1643_s6 = smov 28   ;;  %v394_v63 = vld [vmem:[%s1719_s5 + $0x60] sm:$0xff] }
  0x1e   : > { %v366_v11 = vld [vmem:[%s322_s25] sm:$0xff]  ;;  %v367_v12 = vld [vmem:[%s322_s25 + $0x8] sm:$0xff]  ;;  %2469 = vst [vmem:[#allocation5_spill] sm:$0xff] %v1812_v34  ;;  %v483_v35 = vsel %vm477_vm0, %v481_v32, %v482_v33  ;;  %2470 = vst [vmem:[#allocation6_spill] sm:$0xff] %v1831_v38  ;;  %v519_v40 = vsel %vm477_vm0, %v482_v33, 0.0  ;;  %v1840_v42 = vsel %vm418_vm1, 0.0, %v437_v39 }
  0x1f   : > { %v1761_v13 = vmul.f32 %v371_v9, %v366_v11  ;;  %v373_v14 = vmul.f32 %v371_v9, %v367_v12  ;;  %v1844_v43 = vsel %vm418_vm1, 0.0, %v425_v41  ;;  %v1856_v45 = vld [vmem:[%s1719_s5 + $0x18] sm:$0xff]  ;;  %v438_v46 = vrot.slane %v1851_v44, 7  ;;  %s1644_s23 = smov 32   ;;  %p376_p11 = scmp.lt.s32.totalorder %s1619_s15, 1 }
  0x20   : > { %602 = vrot.lane.b32.xlu1 %v1751_v8, %s1638_s10  ;;  %v426_v47 = vrot.slane %v1856_v45, 7  ;;  %v496_v50 = vrot.slane %v1823_v36, 1  ;;  %v497_v51 = vrot.slane %v1851_v44, 1  ;;  %v484_v53 = vrot.slane %v1828_v37, 1 }
  0x21   : > { %528 = vrot.lane.b32.xlu0 %v1761_v13, %s1637_s7  ;;  %v478_v16 = vrot.slane %v1761_v13, 1  ;;  %v479_v17 = vrot.slane %v373_v14, 1  ;;  %v2454_v21 = vrot.slane %v1761_v13, 7  ;;  %v420_v22 = vrot.slane %v373_v14, 7 }
  0x22   : > { %v1864_v48 = vsel %vm418_vm1, %v437_v39, %v438_v46  ;;  %v1869_v49 = vsel %vm418_vm1, %v425_v41, %v426_v47  ;;  %v485_v54 = vrot.slane %v1856_v45, 1  ;;  %v498_v55 = vsel %vm477_vm0, %v496_v50, %v497_v51 }
  0x23   : > { %v480_v19 = vsel %vm477_vm0, %v478_v16, %v479_v17  ;;  %v1782_v25 = vsel %vm418_vm1, %v2454_v21, %v420_v22  ;;  %v518_v26 = vsel %vm477_vm0, %v479_v17, 0.0  ;;  %2471 = vst [vmem:[#allocation7_spill] sm:$0xff] %v1864_v48  ;;  %2472 = vst [vmem:[#allocation8_spill] sm:$0xff] %v1869_v49  ;;  %v524_v61 = vsel %vm477_vm0, %v497_v51, 0.0  ;;  %v395_v16 = vld [vmem:[%s1719_s5 + $0x68] sm:$0xff] }
  0x24   : > { %530 = vrot.lane.b32.xlu1 %v373_v14, %s1637_s7  ;;  %v486_v58 = vsel %vm477_vm0, %v484_v53, %v485_v54  ;;  %v520_v62 = vsel %vm477_vm0, %v485_v54, 0.0  ;;  %v440_v3 = vrot.slane %v394_v63, 7  ;;  %v387_v17 = vld [vmem:[%s1719_s5 + $0x28] sm:$0xff]  ;;  %v500_v41 = vrot.slane %v395_v16, 1 }
  0x25   : > { %584 = vrot.lane.b32.xlu0 %v480_v19, %s1638_s10  ;;  %v441_v19 = vrot.slane %v395_v16, 7  ;;  %v429_v22 = vrot.slane %v387_v17, 7  ;;  %v488_v46 = vrot.slane %v387_v17, 1 }
  0x26   : > { %v1938_v5 = vsel %vm418_vm1, 0.0, %v440_v3  ;;  %v525_v60 = vsel %vm477_vm0, %v500_v41, 0.0 }
  0x27   : > { %2473 = vst [vmem:[#allocation9_spill] sm:$0xff] %v1938_v5 }
  0x28   : > { %656 = vrot.lane.b32.xlu1 %v1775_v23, %s1639_s11 }
  0x29   : > { %586 = vrot.lane.b32.xlu0 %v518_v26, %s1638_s10  ;;  %v1967_v26 = vsel %vm418_vm1, %v440_v3, %v441_v19  ;;  %v2045_v19 = vld [vmem:[%s1719_s5 + $0x70] sm:$0xff] }
  0x2a   : > { %2475 = vst [vmem:[#allocation11_spill] sm:$0xff] %v1967_v26 }
  0x2c   : > { %658 = vrot.lane.b32.xlu1 %v1788_v28, %s1639_s11 }
  0x2d   : > { %642 = vrot.lane.b32.xlu0 %v1792_v29, %s1639_s11 }
  0x30   : > { %704 = vrot.lane.b32.xlu1 %v1757_v10, %s1640_s27 }
  0x31   : > { %688 = vrot.lane.b32.xlu0 %v1728_v2, %s1640_s27 }
  0x34   : > { %548 = vrot.lane.b32.xlu1 %v1757_v10, %s1637_s7 }
  0x35   : > { %532 = vrot.lane.b32.xlu0 %v1728_v2, %s1637_s7  ;;  %v386_v2 = vld [vmem:[%s1719_s5 + $0x20] sm:$0xff] }
  0x36   : > { %v428_v4 = vrot.slane %v386_v2, 7 }
  0x38   : > { %706 = vrot.lane.b32.xlu1 %v1768_v18, %s1640_s27  ;;  %v1946_v12 = vsel %vm418_vm1, 0.0, %v428_v4  ;;  %v1974_v30 = vsel %vm418_vm1, %v428_v4, %v429_v22 }
  0x39   : > { %690 = vrot.lane.b32.xlu0 %v383_v20, %s1640_s27  ;;  %2474 = vst [vmem:[#allocation10_spill] sm:$0xff] %v1946_v12  ;;  %2476 = vst [vmem:[#allocation12_spill] sm:$0xff] %v1974_v30 }
  0x3c   : > { %753 = vrot.lane.b32.xlu1 %v1812_v34, %s1641_s29 }
  0x3d   : > { %737 = vrot.lane.b32.xlu0 %v483_v35, %s1641_s29 }
  0x40   : > { %550 = vrot.lane.b32.xlu1 %v1768_v18, %s1637_s7 }
  0x41   : > { %534 = vrot.lane.b32.xlu0 %v383_v20, %s1637_s7 }
  0x44   : > { %604 = vrot.lane.b32.xlu1 %v1812_v34, %s1638_s10 }
  0x45   : > { %588 = vrot.lane.b32.xlu0 %v483_v35, %s1638_s10 }
  0x48   : > { %755 = vrot.lane.b32.xlu1 %v1831_v38, %s1641_s29 }
  0x49   : > { %739 = vrot.lane.b32.xlu0 %v519_v40, %s1641_s29 }
  0x4c   : > { %802 = vrot.lane.b32.xlu1 %v1840_v42, %s1642_s30 }
  0x4d   : > { %786 = vrot.lane.b32.xlu0 %v1844_v43, %s1642_s30 }
  0x50   : > { %606 = vrot.lane.b32.xlu1 %v1831_v38, %s1638_s10  ;;  %v432_v38 = vrot.slane %v1722_v0, 7 }
  0x51   : > { %590 = vrot.lane.b32.xlu0 %v519_v40, %s1638_s10  ;;  %v499_v40 = vrot.slane %v394_v63, 1 }
  0x53   : > { %v501_v50 = vsel %vm477_vm0, %v499_v40, %v500_v41  ;;  %v443_v40 = vrot.slane %v2045_v19, 7 }
  0x54   : > { %660 = vrot.lane.b32.xlu1 %v1840_v42, %s1639_s11 }
  0x55   : > { %644 = vrot.lane.b32.xlu0 %v1844_v43, %s1639_s11 }
  0x58   : > { %804 = vrot.lane.b32.xlu1 %v1864_v48, %s1642_s30 }
  0x59   : > { %788 = vrot.lane.b32.xlu0 %v1869_v49, %s1642_s30 }
  0x5c   : > { %850 = vrot.lane.b32.xlu1 %v1823_v36, %s1643_s6 }
  0x5d   : > { %834 = vrot.lane.b32.xlu0 %v1828_v37, %s1643_s6 }
  0x60   : > { %662 = vrot.lane.b32.xlu1 %v1864_v48, %s1639_s11 }
  0x61   : > { %646 = vrot.lane.b32.xlu0 %v1869_v49, %s1639_s11 }
  0x64   : > { %708 = vrot.lane.b32.xlu1 %v1823_v36, %s1640_s27 }
  0x65   : > { %692 = vrot.lane.b32.xlu0 %v1828_v37, %s1640_s27 }
  0x68   : > { %852 = vrot.lane.b32.xlu1 %v1851_v44, %s1643_s6 }
  0x69   : > { %836 = vrot.lane.b32.xlu0 %v1856_v45, %s1643_s6 }
  0x6c   : > { %899 = vrot.lane.b32.xlu1 %v498_v55, %s1644_s23 }
  0x6d   : > { %883 = vrot.lane.b32.xlu0 %v486_v58, %s1644_s23 }
  0x70   : > { %552 = vrot.lane.b32.xlu1 %v1823_v36, %s1637_s7 }
  0x71   : > { %536 = vrot.lane.b32.xlu0 %v1828_v37, %s1637_s7 }
  0x74   : > { %710 = vrot.lane.b32.xlu1 %v1851_v44, %s1640_s27 }
  0x75   : > { %694 = vrot.lane.b32.xlu0 %v1856_v45, %s1640_s27 }
  0x78   : > { %757 = vrot.lane.b32.xlu1 %v498_v55, %s1641_s29 }
  0x79   : > { %741 = vrot.lane.b32.xlu0 %v486_v58, %s1641_s29 }
  0x7c   : > { %901 = vrot.lane.b32.xlu1 %v524_v61, %s1644_s23 }
  0x7d   : > { %885 = vrot.lane.b32.xlu0 %v520_v62, %s1644_s23 }
  0x80   : > { %554 = vrot.lane.b32.xlu1 %v1851_v44, %s1637_s7 }
  0x81   : > { %538 = vrot.lane.b32.xlu0 %v1856_v45, %s1637_s7  ;;  %v487_v45 = vrot.slane %v386_v2, 1 }
  0x83   : > { %v489_v52 = vsel %vm477_vm0, %v487_v45, %v488_v46 }
  0x84   : > { %608 = vrot.lane.b32.xlu1 %v498_v55, %s1638_s10 }
  0x85   : > { %592 = vrot.lane.b32.xlu0 %v486_v58, %s1638_s10 }
  0x88   : > { %759 = vrot.lane.b32.xlu1 %v524_v61, %s1641_s29 }
  0x89   : > { %743 = vrot.lane.b32.xlu0 %v520_v62, %s1641_s29 }
  0x8a   : > { %v1941_v9 = vpop.permute.xlu1 %546  ;;  %v1943_v11 = vpop.permute.xlu0 %544 }
  0x8c   : > { %806 = vrot.lane.b32.xlu1 %v1938_v5, %s1642_s30 }
  0x8d   : > { %790 = vrot.lane.b32.xlu0 %v1946_v12, %s1642_s30 }
  0x8e   : > { %v1952_v14 = vpop.permute.xlu1 %600  ;;  %v1954_v15 = vpop.permute.xlu0 %640 }
  0x90   : > { %610 = vrot.lane.b32.xlu1 %v524_v61, %s1638_s10 }
  0x91   : > { %594 = vrot.lane.b32.xlu0 %v520_v62, %s1638_s10  ;;  %v521_v62 = vsel %vm477_vm0, %v488_v46, 0.0 }
  0x92   : > { %v1960_v20 = vpop.permute.xlu1 %602 }
  0x93   : > { %v1962_v24 = vpop.permute.xlu0 %528 }
  0x94   : > { %664 = vrot.lane.b32.xlu1 %v1938_v5, %s1639_s11 }
  0x95   : > { %648 = vrot.lane.b32.xlu0 %v1946_v12, %s1639_s11 }
  0x96   : > { %v1971_v27 = vpop.permute.xlu1 %530 }
  0x97   : > { %v1976_v31 = vpop.permute.xlu0 %584 }
  0x98   : > { %808 = vrot.lane.b32.xlu1 %v1967_v26, %s1642_s30 }
  0x99   : > { %792 = vrot.lane.b32.xlu0 %v1974_v30, %s1642_s30 }
  0x9a   : > { %v1982_v32 = vpop.permute.xlu1 %656 }
  0x9b   : > { %v1984_v33 = vpop.permute.xlu0 %586 }
  0x9c   : > { %854 = vrot.lane.b32.xlu1 %v394_v63, %s1643_s6 }
  0x9d   : > { %838 = vrot.lane.b32.xlu0 %v386_v2, %s1643_s6 }
  0x9e   : > { %v1988_v35 = vpop.permute.xlu1 %658 }
  0x9f   : > { %v1990_v36 = vpop.permute.xlu0 %642 }
  0xa0   : > { %666 = vrot.lane.b32.xlu1 %v1967_v26, %s1639_s11 }
  0xa1   : > { %650 = vrot.lane.b32.xlu0 %v1974_v30, %s1639_s11  ;;  %v2064_v30 = vld [vmem:[%s1719_s5 + $0x78] sm:$0xff]  ;;  %s339_s5 = sadd.s32 8, %s1703_s22 }
  0xa2   : > { %v1996_v37 = vpop.permute.xlu1 %704  ;;  %v444_v12 = vrot.slane %v2064_v30, 7  ;;  %p2113_p10 = scmp.lt.s32.totalorder %s339_s5, 15 }
  0xa3   : > { %v1998_v39 = vpop.permute.xlu0 %688 }
  0xa4   : > { %712 = vrot.lane.b32.xlu1 %v394_v63, %s1640_s27  ;;  %v445_v49 = vsel %vm418_vm1, %v443_v40, %v444_v12  ;;  %s2505_s5 = smov (!%p2113_p10, %s339_s5), 15 }
  0xa5   : > { %696 = vrot.lane.b32.xlu0 %v386_v2, %s1640_s27  ;;  %s2507_s5 = smov (!%p2113_p10, %s2505_s5), 15 }
  0xa6   : > { %v549_v44 = vpop.permute.xlu1 %548  ;;  %s1456_s22 = sshll.u32 %s2507_s5, 1 }
  0xa7   : > { %v2002_v47 = vpop.permute.xlu0 %532  ;;  %v942_v34 = vsel %vm931_vm3, %v1775_v23, %v549_v44 }
  0xa8   : > { %856 = vrot.lane.b32.xlu1 %v395_v16, %s1643_s6  ;;  %v934_v48 = vsel %vm931_vm3, %v1743_v7, %v2002_v47 }
  0xa9   : > { %840 = vrot.lane.b32.xlu0 %v387_v17, %s1643_s6 }
  0xaa   : > { %v2007_v51 = vpop.permute.xlu1 %706 }
  0xab   : > { %v2010_v53 = vpop.permute.xlu0 %690 }
  0xac   : > { %903 = vrot.lane.b32.xlu1 %v501_v50, %s1644_s23 }
  0xad   : > { %887 = vrot.lane.b32.xlu0 %v489_v52, %s1644_s23 }
  0xae   : > { %v2014_v54 = vpop.permute.xlu1 %753 }
  0xaf   : > { %v2016_v55 = vpop.permute.xlu0 %737 }
  0xb0   : > { %556 = vrot.lane.b32.xlu1 %v394_v63, %s1637_s7 }
  0xb1   : > { %540 = vrot.lane.b32.xlu0 %v386_v2, %s1637_s7 }
  0xb2   : > { %v2020_v56 = vpop.permute.xlu1 %550 }
  0xb3   : > { %v2022_v57 = vpop.permute.xlu0 %534 }
  0xb4   : > { %714 = vrot.lane.b32.xlu1 %v395_v16, %s1640_s27 }
  0xb5   : > { %698 = vrot.lane.b32.xlu0 %v387_v17, %s1640_s27 }
  0xb6   : > { %v605_v58 = vpop.permute.xlu1 %604 }
  0xb7   : > { %v589_v59 = vpop.permute.xlu0 %588 }
  0xb8   : > { %761 = vrot.lane.b32.xlu1 %v501_v50, %s1641_s29 }
  0xb9   : > { %745 = vrot.lane.b32.xlu0 %v489_v52, %s1641_s29 }
  0xba   : > { %v2029_v61 = vpop.permute.xlu1 %755 }
  0xbb   : > { %v2032_v63 = vpop.permute.xlu0 %739 }
  0xbc   : > { %905 = vrot.lane.b32.xlu1 %v525_v60, %s1644_s23 }
  0xbd   : > { %889 = vrot.lane.b32.xlu0 %v521_v62, %s1644_s23 }
  0xbe   : > { %v2036_v2 = vpop.permute.xlu1 %802 }
  0xbf   : > { %v2038_v3 = vpop.permute.xlu0 %786 }
  0xc0   : > { %558 = vrot.lane.b32.xlu1 %v395_v16, %s1637_s7  ;;  %v431_v16 = vrot.slane %v1725_v1, 7 }
  0xc1   : > { %542 = vrot.lane.b32.xlu0 %v387_v17, %s1637_s7  ;;  %v475_v17 = vsel %vm418_vm1, 0.0, %v443_v40 }
  0xc2   : > { %v2042_v4 = vpop.permute.xlu1 %606 }
  0xc3   : > { %v2047_v22 = vpop.permute.xlu0 %590 }
  0xc4   : > { %612 = vrot.lane.b32.xlu1 %v501_v50, %s1638_s10  ;;  %v471_v50 = vsel %vm418_vm1, 0.0, %v431_v16 }
  0xc5   : > { %596 = vrot.lane.b32.xlu0 %v489_v52, %s1638_s10  ;;  %v940_v12 = vsel %vm931_vm3, %v471_v50, %v1943_v11 }
  0xc6   : > { %v661_v41 = vpop.permute.xlu1 %660 }
  0xc7   : > { %v645_v45 = vpop.permute.xlu0 %644 }
  0xc8   : > { %763 = vrot.lane.b32.xlu1 %v525_v60, %s1641_s29 }
  0xc9   : > { %747 = vrot.lane.b32.xlu0 %v521_v62, %s1641_s29 }
  0xca   : > { %v2056_v46 = vpop.permute.xlu1 %804 }
  0xcb   : > { %v2058_v21 = vpop.permute.xlu0 %788 }
  0xcc   : > { %810 = vrot.lane.b32.xlu1 %v475_v17, %s1642_s30 }
  0xcd   : > { %794 = vrot.lane.b32.xlu0 %v471_v50, %s1642_s30 }
  0xce   : > { %v851_v52 = vpop.permute.xlu1 %850 }
  0xcf   : > { %v835_v26 = vpop.permute.xlu0 %834 }
  0xd0   : > { %614 = vrot.lane.b32.xlu1 %v525_v60, %s1638_s10  ;;  %v2477_v60 = vrot.slane %v1761_v13, 7 }
  0xd1   : > { %598 = vrot.lane.b32.xlu0 %v521_v62, %s1638_s10  ;;  %v959_v62 = vsel %vm948_vm4, %v942_v34, %v605_v58  ;;  %v433_v34 = vsel %vm418_vm1, %v431_v16, %v432_v38  ;;  %s348_s10 = sadd.s32 %s1456_s22, %s1707_s24 }
  0xd2   : > { %v2069_v5 = vpop.permute.xlu1 %662  ;;  %v467_v10 = vsel %vm418_vm1, 0.0, %v2477_v60  ;;  %v976_v44 = vsel %vm965_vm5, %v959_v62, %v661_v41  ;;  %v935_v60 = vsel %vm931_vm3, %v1792_v29, %v2022_v57  ;;  %s1458_s24 = sshll.u32 %s348_s10, 3 }
  0xd3   : > { %v2074_v18 = vpop.permute.xlu0 %646  ;;  %v932_v7 = vsel %vm931_vm3, %v467_v10, %v1962_v24  ;;  %s350_s16 = scalar_lea.vmem %s2451_s2, %s1458_s24 }
  0xd4   : > { %668 = vrot.lane.b32.xlu1 %v475_v17, %s1639_s11  ;;  %v951_v17 = vsel %vm948_vm4, %v934_v48, %v589_v59  ;;  %v957_v48 = vsel %vm948_vm4, %v940_v12, %v1952_v14 }
  0xd5   : > { %652 = vrot.lane.b32.xlu0 %v471_v50, %s1639_s11  ;;  %v968_v47 = vsel %vm965_vm5, %v951_v17, %v645_v45  ;;  %v974_v11 = vsel %vm965_vm5, %v957_v48, %v1982_v32  ;;  %v502_v50 = vrot.slane %v2045_v19, 1 }
  0xd6   : > { %v709_v23 = vpop.permute.xlu1 %708  ;;  %v991_v14 = vsel %vm982_vm6, %v974_v11, %v1996_v37 }
  0xd7   : > { %v2089_v13 = vsel %vm982_vm6, %v976_v44, %v709_v23  ;;  %v693_v58 = vpop.permute.xlu0 %692  ;;  %v949_v23 = vsel %vm948_vm4, %v932_v7, %v1976_v31  ;;  %v1008_v31 = vsel %vm999_vm7, %v991_v14, %v2014_v54  ;;  %v941_v44 = vsel %vm931_vm3, %v433_v34, %v1941_v9 }
  0xd8   : > { %812 = vrot.lane.b32.xlu1 %v445_v49, %s1642_s30  ;;  %v2104_v38 = vsel %vm982_vm6, %v968_v47, %v693_v58  ;;  %v966_v24 = vsel %vm965_vm5, %v949_v23, %v1954_v15  ;;  %v1025_v40 = vsel %vm1016_vm8, %v1008_v31, %v2036_v2  ;;  %v933_v9 = vsel %vm931_vm3, %v1782_v25, %v1971_v27  ;;  %v374_v58 = vld [vmem:[%s350_s16] sm:$0xff] }
  0xd9   : > { %796 = vrot.lane.b32.xlu0 %v433_v34, %s1642_s30  ;;  %v983_v59 = vsel %vm982_vm6, %v966_v24, %v1998_v39  ;;  %v1042_v37 = vsel %vm1033_vm9, %v1025_v40, %v851_v52  ;;  %v503_v52 = vrot.slane %v2064_v30, 1  ;;  %v375_v24 = vld [vmem:[%s350_s16 + $0x8] sm:$0xff] }
  0xda   : > { %v2109_v10 = vpop.permute.xlu1 %852  ;;  %v1000_v15 = vsel %vm999_vm7, %v983_v59, %v2016_v55 }
  0xdb   : > { %v2123_v32 = vpop.permute.xlu0 %836  ;;  %v1017_v39 = vsel %vm1016_vm8, %v1000_v15, %v2038_v3  ;;  %v943_v3 = vsel %vm931_vm3, %v1788_v28, %v2020_v56  ;;  %v526_v11 = vsel %vm477_vm0, %v503_v52, 0.0 }
  0xdc   : > { %858 = vrot.lane.b32.xlu1 %v2045_v19, %s1643_s6  ;;  %v1034_v2 = vsel %vm1033_vm9, %v1017_v39, %v835_v26 }
  0xdd   : > { %842 = vrot.lane.b32.xlu0 %v1725_v1, %s1643_s6 }
  0xde   : > { %v900_v54 = vpop.permute.xlu1 %899 }
  0xdf   : > { %v1059_v41 = vsel %vm1050_vm10, %v1042_v37, %v900_v54  ;;  %v884_v45 = vpop.permute.xlu0 %883 }
  0xe0   : > { %670 = vrot.lane.b32.xlu1 %v445_v49, %s1639_s11  ;;  %1527 = vmatprep.mubr.msk.f32.mxu1 %vm1072_vm11, %v1059_v41  ;;  %v1051_v55 = vsel %vm1050_vm10, %v1034_v2, %v884_v45  ;;  %v960_v49 = vsel %vm948_vm4, %v943_v3, %v2042_v4  ;;  %v952_v4 = vsel %vm948_vm4, %v935_v60, %v2047_v22  ;;  %v2479_v2 = vld [vmem:[#allocation7_spill] sm:$0xff] }
  0xe1   : > { %654 = vrot.lane.b32.xlu0 %v433_v34, %s1639_s11  ;;  %1515 = vmatprep.mubr.msk.f32.mxu0 %vm1072_vm11, %v1051_v55  ;;  %v977_v56 = vsel %vm965_vm5, %v960_v49, %v2069_v5  ;;  %v969_v29 = vsel %vm965_vm5, %v952_v4, %v2074_v18  ;;  %v504_v22 = vsel %vm477_vm0, %v502_v50, %v503_v52  ;;  %s377_s11 = scalar_select %p376_p11, 1, 0  ;;  %v2480_v55 = vld [vmem:[#allocation4_spill] sm:$0xff] }
  0xe2   : > { %v553_v16 = vpop.permute.xlu1 %552 }
  0xe3   : > { %v2154_v26 = vpop.permute.xlu0 %536  ;;  %s378_s15 = scvt.s32.f32 %s377_s11 }
  0xe4   : > { %716 = vrot.lane.b32.xlu1 %v2045_v19, %s1640_s27  ;;  %v936_v31 = vsel %vm931_vm3, %v1844_v43, %v2154_v26  ;;  %v2481_v26 = vld [vmem:[#allocation8_spill] sm:$0xff] }
  0xe5   : > { %700 = vrot.lane.b32.xlu0 %v1725_v1, %s1640_s27  ;;  %v958_v1 = vsel %vm948_vm4, %v941_v44, %v1960_v20  ;;  %v950_v20 = vsel %vm948_vm4, %v933_v9, %v1984_v33  ;;  %v379_v48 = vstv %s378_s15 }
  0xe6   : > { %v711_v62 = vpop.permute.xlu1 %710  ;;  %v975_v18 = vsel %vm965_vm5, %v958_v1, %v1988_v35  ;;  %v967_v12 = vsel %vm965_vm5, %v950_v20, %v1990_v36  ;;  %v381_v40 = vmul.f32 %v379_v48, %v375_v24 }
  0xe7   : > { %v2173_v19 = vsel %vm982_vm6, %v977_v56, %v711_v62  ;;  %v695_v5 = vpop.permute.xlu0 %694  ;;  %v992_v34 = vsel %vm982_vm6, %v975_v18, %v2007_v51  ;;  %v984_v35 = vsel %vm982_vm6, %v967_v12, %v2010_v53 }
  0xe8   : > { %860 = vrot.lane.b32.xlu1 %v2064_v30, %s1643_s6  ;;  %v2184_v57 = vsel %vm982_vm6, %v969_v29, %v695_v5  ;;  %v1009_v25 = vsel %vm999_vm7, %v992_v34, %v2029_v61  ;;  %v1001_v51 = vsel %vm999_vm7, %v984_v35, %v2032_v63  ;;  %v447_v54 = vrot.slane %v381_v40, 7  ;;  %v2482_v29 = vld [vmem:[#allocation2_spill] sm:$0xff]  ;;  %v2484_v34 = vld [vmem:[#allocation5_spill] sm:$0xff] }
  0xe9   : > { %844 = vrot.lane.b32.xlu0 %v1722_v0, %s1643_s6  ;;  %v1026_v33 = vsel %vm1016_vm8, %v1009_v25, %v2056_v46  ;;  %v1018_v7 = vsel %vm1016_vm8, %v1001_v51, %v2058_v21  ;;  %v506_v44 = vrot.slane %v381_v40, 1  ;;  %v2485_v51 = vld [vmem:[#allocation6_spill] sm:$0xff] }
  0xea   : > { %v2195_v17 = vpop.permute.xlu1 %757  ;;  %v1043_v36 = vsel %vm1033_vm9, %v1026_v33, %v2109_v10  ;;  %v1035_v53 = vsel %vm1033_vm9, %v1018_v7, %v2123_v32  ;;  %v380_v10 = vmul.f32 %v379_v48, %v374_v58 }
  0xeb   : > { %v2207_v27 = vpop.permute.xlu0 %741  ;;  %v527_v20 = vsel %vm477_vm0, %v506_v44, 0.0 }
  0xec   : > { %907 = vrot.lane.b32.xlu1 %v504_v22, %s1644_s23  ;;  %v446_v15 = vrot.slane %v380_v10, 7  ;;  %v505_v4 = vrot.slane %v380_v10, 1  ;;  %v1002_v58 = vsel %vm999_vm7, %v2104_v38, %v2207_v27 }
  0xed   : > { %891 = vrot.lane.b32.xlu0 %v1740_v6, %s1644_s23 }
  0xee   : > { %v902_v61 = vpop.permute.xlu1 %901  ;;  %v476_v37 = vsel %vm418_vm1, 0.0, %v446_v15  ;;  %v448_v41 = vsel %vm418_vm1, %v446_v15, %v447_v54 }
  0xef   : > { %v1060_v47 = vsel %vm1050_vm10, %v1043_v36, %v902_v61  ;;  %v886_v63 = vpop.permute.xlu0 %885 }
  0xf0   : > { %718 = vrot.lane.b32.xlu1 %v2064_v30, %s1640_s27  ;;  %1528 = vmatmul.mubr.msk.f32.vlgmr.msra.gmra.mxu1 %vm1072_vm11, %v1060_v47  ;;  %v1052_v46 = vsel %vm1050_vm10, %v1035_v53, %v886_v63  ;;  %v944_v30 = vsel %vm931_vm3, %v1840_v42, %v553_v16  ;;  %v1010_v63 = vsel %vm999_vm7, %v2089_v13, %v2195_v17 }
  0xf1   : > { %702 = vrot.lane.b32.xlu0 %v1722_v0, %s1640_s27  ;;  %1516 = vmatmul.mubr.msk.f32.vlgmr.msra.gmra.mxu0 %vm1072_vm11, %v1052_v46 }
  0xf2   : > { %v555_v21 = vpop.permute.xlu1 %554 }
  0xf3   : > { %v539_v23 = vpop.permute.xlu0 %538  ;;  %v945_v45 = vsel %vm931_vm3, %v2479_v2, %v555_v21 }
  0xf4   : > { %765 = vrot.lane.b32.xlu1 %v504_v22, %s1641_s29  ;;  %v937_v49 = vsel %vm931_vm3, %v2481_v26, %v539_v23  ;;  %v507_v22 = vsel %vm477_vm0, %v505_v4, %v506_v44  ;;  %v2487_v26 = vld [vmem:[#allocation10_spill] sm:$0xff] }
  0xf5   : > { %749 = vrot.lane.b32.xlu0 %v1740_v6, %s1641_s29 }
  0xf6   : > { %v609_v14 = vpop.permute.xlu1 %608 }
  0xf7   : > { %v961_v0 = vsel %vm948_vm4, %v944_v30, %v609_v14  ;;  %v593_v32 = vpop.permute.xlu0 %592 }
  0xf8   : > { %909 = vrot.lane.b32.xlu1 %v526_v11, %s1644_s23  ;;  %v953_v59 = vsel %vm948_vm4, %v936_v31, %v593_v32 }
  0xf9   : > { %893 = vrot.lane.b32.xlu0 %v1751_v8, %s1644_s23 }
  0xfa   : > { %v2249_v42 = vpop.permute.xlu1 %759 }
  0xfb   : > { %v2251_v6 = vpop.permute.xlu0 %743 }
  0xfc   : > { %767 = vrot.lane.b32.xlu1 %v526_v11, %s1641_s29 }
  0xfd   : > { %751 = vrot.lane.b32.xlu0 %v1751_v8, %s1641_s29 }
  0xfe   : > { %v807_v43 = vpop.permute.xlu1 %806 }
  0xff   : > { %v791_v39 = vpop.permute.xlu0 %790  ;;  %v1027_v21 = vsel %vm1016_vm8, %v1010_v63, %v807_v43 }
 0x100   : > { %814 = vrot.lane.b32.xlu1 %v476_v37, %s1642_s30  ;;  %v1019_v11 = vsel %vm1016_vm8, %v1002_v58, %v791_v39  ;;  %v1003_v37 = vsel %vm999_vm7, %v2184_v57, %v2251_v6  ;;  %v2486_v57 = vld [vmem:[#allocation9_spill] sm:$0xff] }
 0x101   : > { %798 = vrot.lane.b32.xlu0 %v2480_v55, %s1642_s30 }
 0x102   : > { %v611_v16 = vpop.permute.xlu1 %610 }
 0x103   : > { %v962_v3 = vsel %vm948_vm4, %v945_v45, %v611_v16  ;;  %v595_v50 = vpop.permute.xlu0 %594 }
 0x104   : > { %816 = vrot.lane.b32.xlu1 %v448_v41, %s1642_s30  ;;  %v954_v8 = vsel %vm948_vm4, %v937_v49, %v595_v50 }
 0x105   : > { %800 = vrot.lane.b32.xlu0 %v1788_v28, %s1642_s30  ;;  %v2483_v28 = vld [vmem:[#allocation3_spill] sm:$0xff]  ;;  %s2400_s30 = scalar_lea.vmem %s2453_s4, %s1451_s28 }
 0x106   : > { %v665_v52 = vpop.permute.xlu1 %664 }
 0x107   : > { %v978_v60 = vsel %vm965_vm5, %v961_v0, %v665_v52  ;;  %v649_v56 = vpop.permute.xlu0 %648 }
 0x108   : > { %862 = vrot.lane.b32.xlu1 %v380_v10, %s1643_s6  ;;  %v970_v62 = vsel %vm965_vm5, %v953_v59, %v649_v56  ;;  %v1011_v59 = vsel %vm999_vm7, %v2173_v19, %v2249_v42 }
 0x109   : > { %846 = vrot.lane.b32.xlu0 %v2482_v29, %s1643_s6 }
 0x10a   : > { %v809_v5 = vpop.permute.xlu1 %808 }
 0x10b   : > { %v793_v1 = vpop.permute.xlu0 %792  ;;  %v1028_v15 = vsel %vm1016_vm8, %v1011_v59, %v809_v5 }
 0x10c   : > { %864 = vrot.lane.b32.xlu1 %v381_v40, %s1643_s6  ;;  %v1020_v39 = vsel %vm1016_vm8, %v1003_v37, %v793_v1 }
 0x10d   : > { %848 = vrot.lane.b32.xlu0 %v2483_v28, %s1643_s6 }
 0x10e   : > { %v855_v9 = vpop.permute.xlu1 %854 }
 0x10f   : > { %v839_v18 = vpop.permute.xlu0 %838  ;;  %v1044_v48 = vsel %vm1033_vm9, %v1027_v21, %v855_v9 }
 0x110   : > { %911 = vrot.lane.b32.xlu1 %v507_v22, %s1644_s23  ;;  %v1036_v30 = vsel %vm1033_vm9, %v1019_v11, %v839_v18 }
 0x111   : > { %895 = vrot.lane.b32.xlu0 %v2484_v34, %s1644_s23 }
 0x112   : > { %v667_v12 = vpop.permute.xlu1 %666 }
 0x113   : > { %v979_v25 = vsel %vm965_vm5, %v962_v3, %v667_v12  ;;  %v651_v35 = vpop.permute.xlu0 %650 }
 0x114   : > { %913 = vrot.lane.b32.xlu1 %v527_v20, %s1644_s23  ;;  %v971_v33 = vsel %vm965_vm5, %v954_v8, %v651_v35 }
 0x115   : > { %897 = vrot.lane.b32.xlu0 %v2485_v51, %s1644_s23 }
 0x116   : > { %v713_v36 = vpop.permute.xlu1 %712 }
 0x117   : > { %v2289_v61 = vsel %vm982_vm6, %v978_v60, %v713_v36  ;;  %v697_v7 = vpop.permute.xlu0 %696 }
 0x118   : > { %v2292_v47 = vsel %vm982_vm6, %v970_v62, %v697_v7 }
 0x11a   : > { %v857_v53 = vpop.permute.xlu1 %856 }
 0x11b   : > { %v841_v46 = vpop.permute.xlu0 %840  ;;  %v1045_v54 = vsel %vm1033_vm9, %v1028_v15, %v857_v53 }
 0x11c   : > { %v1037_v2 = vsel %vm1033_vm9, %v1020_v39, %v841_v46 }
 0x11e   : > { %v904_v23 = vpop.permute.xlu1 %903 }
 0x11f   : > { %v1061_v10 = vsel %vm1050_vm10, %v1044_v48, %v904_v23  ;;  %v888_v14 = vpop.permute.xlu0 %887 }
 0x120   : > { %1530 = vmatprep.mubr.msk.f32.mxu1 %vm1072_vm11, %v1061_v10  ;;  %v1053_v13 = vsel %vm1050_vm10, %v1036_v30, %v888_v14 }
 0x121   : > { %1518 = vmatprep.mubr.msk.f32.mxu0 %vm1072_vm11, %v1053_v13 }
 0x122   : > { %v557_v17 = vpop.permute.xlu1 %556 }
 0x123   : > { %v541_v24 = vpop.permute.xlu0 %540  ;;  %v946_v6 = vsel %vm931_vm3, %v2486_v57, %v557_v17 }
 0x124   : > { %v938_v49 = vsel %vm931_vm3, %v2487_v26, %v541_v24 }
 0x126   : > { %v715_v0 = vpop.permute.xlu1 %714 }
 0x127   : > { %v996_v38 = vsel %vm982_vm6, %v979_v25, %v715_v0  ;;  %v699_v27 = vpop.permute.xlu0 %698 }
 0x128   : > { %v988_v31 = vsel %vm982_vm6, %v971_v33, %v699_v27 }
 0x12a   : > { %v762_v32 = vpop.permute.xlu1 %761 }
 0x12b   : > { %v746_v40 = vpop.permute.xlu0 %745  ;;  %v1012_v35 = vsel %vm999_vm7, %v2289_v61, %v762_v32 }
 0x12c   : > { %v1004_v36 = vsel %vm999_vm7, %v2292_v47, %v746_v40 }
 0x12e   : > { %v906_v43 = vpop.permute.xlu1 %905 }
 0x12f   : > { %v1062_v41 = vsel %vm1050_vm10, %v1045_v54, %v906_v43  ;;  %v890_v45 = vpop.permute.xlu0 %889 }
 0x130   : > { %1531 = vmatmul.mubr.msk.f32.gmra.mxu1 %vm1072_vm11, %v1062_v41  ;;  %v1054_v19 = vsel %vm1050_vm10, %v1037_v2, %v890_v45 }
 0x131   : > { %1519 = vmatmul.mubr.msk.f32.gmra.mxu0 %vm1072_vm11, %v1054_v19  ;;  %v2488_v19 = vld [vmem:[#allocation11_spill] sm:$0xff] }
 0x132   : > { %v2324_v42 = vpop.permute.xlu1 %558 }
 0x133   : > { %v2326_v55 = vpop.permute.xlu0 %542  ;;  %v947_v57 = vsel %vm931_vm3, %v2488_v19, %v2324_v42 }
 0x136   : > { %v613_v16 = vpop.permute.xlu1 %612 }
 0x137   : > { %v963_v3 = vsel %vm948_vm4, %v946_v6, %v613_v16  ;;  %v597_v50 = vpop.permute.xlu0 %596 }
 0x138   : > { %v955_v8 = vsel %vm948_vm4, %v938_v49, %v597_v50 }
 0x13a   : > { %v764_v52 = vpop.permute.xlu1 %763 }
 0x13b   : > { %v748_v60 = vpop.permute.xlu0 %747  ;;  %v1013_v47 = vsel %vm999_vm7, %v996_v38, %v764_v52 }
 0x13c   : > { %v1005_v14 = vsel %vm999_vm7, %v988_v31, %v748_v60 }
 0x13e   : > { %v811_v56 = vpop.permute.xlu1 %810 }
 0x13f   : > { %v795_v62 = vpop.permute.xlu0 %794  ;;  %v1029_v51 = vsel %vm1016_vm8, %v1012_v35, %v811_v56 }
 0x140   : > { %v1021_v63 = vsel %vm1016_vm8, %v1004_v36, %v795_v62 }
 0x142   : > { %v615_v4 = vpop.permute.xlu1 %614 }
 0x143   : > { %v2334_v44 = vpop.permute.xlu0 %598  ;;  %v964_v49 = vsel %vm948_vm4, %v947_v57, %v615_v4 }
 0x146   : > { %v669_v29 = vpop.permute.xlu1 %668 }
 0x147   : > { %v653_v5 = vpop.permute.xlu0 %652  ;;  %v980_v41 = vsel %vm965_vm5, %v963_v3, %v669_v29  ;;  %v2489_v3 = vld [vmem:[#allocation12_spill] sm:$0xff] }
 0x148   : > { %v972_v6 = vsel %vm965_vm5, %v955_v8, %v653_v5  ;;  %v939_v60 = vsel %vm931_vm3, %v2489_v3, %v2326_v55 }
 0x149   : > { %v956_v29 = vsel %vm948_vm4, %v939_v60, %v2334_v44 }
 0x14a   : > { %v813_v1 = vpop.permute.xlu1 %812 }
 0x14b   : > { %v797_v22 = vpop.permute.xlu0 %796  ;;  %v1030_v30 = vsel %vm1016_vm8, %v1013_v47, %v813_v1 }
 0x14c   : > { %v1022_v24 = vsel %vm1016_vm8, %v1005_v14, %v797_v22 }
 0x14e   : > { %v859_v28 = vpop.permute.xlu1 %858 }
 0x14f   : > { %v843_v9 = vpop.permute.xlu0 %842  ;;  %v1046_v7 = vsel %vm1033_vm9, %v1029_v51, %v859_v28 }
 0x150   : > { %v1038_v21 = vsel %vm1033_vm9, %v1021_v63, %v843_v9 }
 0x152   : > { %v671_v18 = vpop.permute.xlu1 %670 }
 0x153   : > { %v655_v20 = vpop.permute.xlu0 %654  ;;  %v981_v56 = vsel %vm965_vm5, %v964_v49, %v671_v18 }
 0x154   : > { %v973_v22 = vsel %vm965_vm5, %v956_v29, %v655_v20 }
 0x156   : > { %v717_v34 = vpop.permute.xlu1 %716 }
 0x157   : > { %v701_v12 = vpop.permute.xlu0 %700  ;;  %v997_v45 = vsel %vm982_vm6, %v980_v41, %v717_v34 }
 0x158   : > { %v989_v50 = vsel %vm982_vm6, %v972_v6, %v701_v12 }
 0x15a   : > { %v861_v25 = vpop.permute.xlu1 %860 }
 0x15b   : > { %v845_v33 = vpop.permute.xlu0 %844  ;;  %v1047_v13 = vsel %vm1033_vm9, %v1030_v30, %v861_v25 }
 0x15c   : > { %v1039_v27 = vsel %vm1033_vm9, %v1022_v24, %v845_v33 }
 0x15e   : > { %v908_v53 = vpop.permute.xlu1 %907 }
 0x15f   : > { %v1063_v46 = vsel %vm1050_vm10, %v1046_v7, %v908_v53  ;;  %v892_v58 = vpop.permute.xlu0 %891 }
 0x160   : > { %1533 = vmatprep.mubr.msk.f32.mxu1 %vm1072_vm11, %v1063_v46  ;;  %v1055_v61 = vsel %vm1050_vm10, %v1038_v21, %v892_v58 }
 0x161   : > { %1521 = vmatprep.mubr.msk.f32.mxu0 %vm1072_vm11, %v1055_v61 }
 0x162   : > { %v719_v48 = vpop.permute.xlu1 %718 }
 0x163   : > { %v703_v23 = vpop.permute.xlu0 %702  ;;  %v998_v4 = vsel %vm982_vm6, %v981_v56, %v719_v48 }
 0x164   : > { %v990_v18 = vsel %vm982_vm6, %v973_v22, %v703_v23 }
 0x166   : > { %v766_v11 = vpop.permute.xlu1 %765 }
 0x167   : > { %v750_v10 = vpop.permute.xlu0 %749  ;;  %v1014_v16 = vsel %vm999_vm7, %v997_v45, %v766_v11 }
 0x168   : > { %v1006_v62 = vsel %vm999_vm7, %v989_v50, %v750_v10 }
 0x16a   : > { %v910_v17 = vpop.permute.xlu1 %909 }
 0x16b   : > { %v1064_v0 = vsel %vm1050_vm10, %v1047_v13, %v910_v17  ;;  %v894_v32 = vpop.permute.xlu0 %893 }
 0x16c   : > { %1534 = vmatmul.mubr.msk.f32.gmra.mxu1 %vm1072_vm11, %v1064_v0  ;;  %v1056_v59 = vsel %vm1050_vm10, %v1039_v27, %v894_v32 }
 0x16d   : > { %1522 = vmatmul.mubr.msk.f32.gmra.mxu0 %vm1072_vm11, %v1056_v59 }
 0x16e   : > { %v768_v38 = vpop.permute.xlu1 %767 }
 0x16f   : > { %v752_v40 = vpop.permute.xlu0 %751  ;;  %v1015_v55 = vsel %vm999_vm7, %v998_v4, %v768_v38 }
 0x170   : > { %v1007_v12 = vsel %vm999_vm7, %v990_v18, %v752_v40 }
 0x172   : > { %v815_v15 = vpop.permute.xlu1 %814 }
 0x173   : > { %v799_v31 = vpop.permute.xlu0 %798  ;;  %v1031_v52 = vsel %vm1016_vm8, %v1014_v16, %v815_v15 }
 0x174   : > { %v1023_v5 = vsel %vm1016_vm8, %v1006_v62, %v799_v31 }
 0x176   : > { %v817_v37 = vpop.permute.xlu1 %816 }
 0x177   : > { %v801_v54 = vpop.permute.xlu0 %800  ;;  %v1032_v44 = vsel %vm1016_vm8, %v1015_v55, %v817_v37 }
 0x178   : > { %v1024_v35 = vsel %vm1016_vm8, %v1007_v12, %v801_v54 }
 0x17a   : > { %v863_v43 = vpop.permute.xlu1 %862 }
 0x17b   : > { %v847_v39 = vpop.permute.xlu0 %846  ;;  %v1048_v42 = vsel %vm1033_vm9, %v1031_v52, %v863_v43 }
 0x17c   : > { %v1040_v28 = vsel %vm1033_vm9, %v1023_v5, %v847_v39 }
 0x17e   : > { %v865_v2 = vpop.permute.xlu1 %864 }
 0x17f   : > { %v849_v26 = vpop.permute.xlu0 %848  ;;  %v1049_v25 = vsel %vm1033_vm9, %v1032_v44, %v865_v2 }
 0x180   : > { %v1041_v51 = vsel %vm1033_vm9, %v1024_v35, %v849_v26 }
 0x182   : > { %v912_v8 = vpop.permute.xlu1 %911 }
 0x183   : > { %v1065_v1 = vsel %vm1050_vm10, %v1048_v42, %v912_v8  ;;  %v896_v9 = vpop.permute.xlu0 %895 }
 0x184   : > { %1536 = vmatprep.mubr.msk.f32.mxu1 %vm1072_vm11, %v1065_v1  ;;  %v1057_v34 = vsel %vm1050_vm10, %v1040_v28, %v896_v9 }
 0x185   : > { %1524 = vmatprep.mubr.msk.f32.mxu0 %vm1072_vm11, %v1057_v34 }
 0x186   : > { %v914_v20 = vpop.permute.xlu1 %913 }
 0x187   : > { %v1066_v33 = vsel %vm1050_vm10, %v1049_v25, %v914_v20  ;;  %v898_v36 = vpop.permute.xlu0 %897 }
 0x188   : > { %1537 = vmatmul.mubr.msk.f32.gmra.mxu1 %vm1072_vm11, %v1066_v33  ;;  %v1058_v7 = vsel %vm1050_vm10, %v1041_v51, %v898_v36 }
 0x189   : > { %1525 = vmatmul.mubr.msk.f32.gmra.mxu0 %vm1072_vm11, %v1058_v7 }
 0x1b0   : > { %v1529_v53 = vpop.f32.mrf.mxu1 }
 0x1b1   : > { %1279 = vst.msk [vmem:[%s2400_s30 + $0x48] sm:$0xff] %vm948_vm4, %v1529_v53  ;;  %v1517_v63 = vpop.f32.mrf.mxu0 }
 0x1b2   : > { %v1231_v46 = vpop.f32.mrf.mxu1  ;;  %1271 = vst.msk [vmem:[%s2400_s30 + $0x8] sm:$0xff] %vm948_vm4, %v1517_v63 }
 0x1b3   : > { %1278 = vst.msk [vmem:[%s2400_s30 + $0x40] sm:$0xff] %vm948_vm4, %v1231_v46  ;;  %v1191_v21 = vpop.f32.mrf.mxu0 }
 0x1b4   : > { %1270 = vst.msk [vmem:[%s2400_s30] sm:$0xff] %vm948_vm4, %v1191_v21 }
 0x1f0   : > { %v1532_v58 = vpop.f32.mrf.mxu1 }
 0x1f1   : > { %1281 = vst.msk [vmem:[%s2400_s30 + $0x58] sm:$0xff] %vm948_vm4, %v1532_v58  ;;  %v1520_v61 = vpop.f32.mrf.mxu0 }
 0x1f2   : > { %v1241_v48 = vpop.f32.mrf.mxu1  ;;  %1273 = vst.msk [vmem:[%s2400_s30 + $0x18] sm:$0xff] %vm948_vm4, %v1520_v61 }
 0x1f3   : > { %1280 = vst.msk [vmem:[%s2400_s30 + $0x50] sm:$0xff] %vm948_vm4, %v1241_v48  ;;  %v1201_v23 = vpop.f32.mrf.mxu0 }
 0x1f4   : > { %1272 = vst.msk [vmem:[%s2400_s30 + $0x10] sm:$0xff] %vm948_vm4, %v1201_v23 }
 0x22c   : > { %v1535_v11 = vpop.f32.mrf.mxu1 }
 0x22d   : > { %1283 = vst.msk [vmem:[%s2400_s30 + $0x68] sm:$0xff] %vm948_vm4, %v1535_v11  ;;  %v1523_v47 = vpop.f32.mrf.mxu0 }
 0x22e   : > { %v1251_v10 = vpop.f32.mrf.mxu1  ;;  %1275 = vst.msk [vmem:[%s2400_s30 + $0x28] sm:$0xff] %vm948_vm4, %v1523_v47 }
 0x22f   : > { %1282 = vst.msk [vmem:[%s2400_s30 + $0x60] sm:$0xff] %vm948_vm4, %v1251_v10  ;;  %v1211_v30 = vpop.f32.mrf.mxu0 }
 0x230   : > { %1274 = vst.msk [vmem:[%s2400_s30 + $0x20] sm:$0xff] %vm948_vm4, %v1211_v30 }
 0x248   : > { %v1538_v14 = vpop.f32.mrf.mxu1 }
 0x249   : > { %1285 = vst.msk [vmem:[%s2400_s30 + $0x78] sm:$0xff] %vm948_vm4, %v1538_v14  ;;  %v1526_v13 = vpop.f32.mrf.mxu0 }
 0x24a   : > { %v1261_v17 = vpop.f32.mrf.mxu1  ;;  %1277 = vst.msk [vmem:[%s2400_s30 + $0x38] sm:$0xff] %vm948_vm4, %v1526_v13 }
 0x24b   : > { %1284 = vst.msk [vmem:[%s2400_s30 + $0x70] sm:$0xff] %vm948_vm4, %v1261_v17  ;;  %v1221_v24 = vpop.f32.mrf.mxu0 }
 0x24c   : > { %1276 = vst.msk [vmem:[%s2400_s30 + $0x30] sm:$0xff] %vm948_vm4, %v1221_v24 }
 0x24d PF: > { %s14_s19 = sadd.s32 1, %s1635_s19   ;;  %s2490_s15 = smov %s1627_s17 }
 0x24e   : > { %p11_p12 = scmp.ge.s32.totalorder %s14_s19, 6   ;;  %s2491_s16 = smov %s1631_s18 }
 0x24f   : > { %s2492_s17 = smov %s2495_s20  ;;  %s2493_s18 = smov %s2499_s21 }
 0x250   :  { %13 = sbr.rel (!%p11_p12) target bundleno = 3 (0x3), region = 72 }

</bundles_post_ra>
